<compile_context>
chip_gen: v6e
topology: v6e:2x2x1
jax: 0.10.0
libtpu: 0.0.40
codegen_flags: <defaults>
</compile_context>

<pallas_src>
import jax
import jax.numpy as jnp
from jax.experimental import pallas as pl
from jax.experimental.pallas import tpu as pltpu


def center_loss_kernel(feat_ref, lab_lane_ref, lab_sub_ref, centers_t_ref,
                       loss_ref, diff_ref, acc_ref, loss_acc_ref, aug_ref):
    # feat_ref     : (1, D, TILE_T)  native dtype -- channel-major, no wrapper transpose/cast
    # lab_lane_ref : (1, 1, TILE_T)  i32          -- lane-dense labels (for the gather one-hot)
    # lab_sub_ref  : (1, TILE_T, 1)  i32          -- sublane-major labels (for the scatter one-hot)
    # centers_t_ref: (D, C) f32                   -- transposed centers, resident across the grid
    # loss_ref     : (1, 1) f32, diff_ref: (C, D) f32 -- accumulator outputs (constant index_map)
    # acc_ref      : (D+1, C) f32 scratch         -- fused [diff_sum ; counts-row] accumulator
    # loss_acc_ref : (D, TILE_T) f32 scratch      -- elementwise squared-error accumulator
    # aug_ref      : (D+1, TILE_T) f32 scratch    -- [diff ; ones-row], ones written once
    b = pl.program_id(0)
    t = pl.program_id(1)
    nb = pl.num_programs(0)
    nt = pl.num_programs(1)

    d, c = centers_t_ref.shape
    tt = feat_ref.shape[2]

    @pl.when(jnp.logical_and(b == 0, t == 0))
    def _init():
        acc_ref[...] = jnp.zeros_like(acc_ref)
        loss_acc_ref[...] = jnp.zeros_like(loss_acc_ref)
        # Row `d` stays as the ones (count) row for every grid step.
        aug_ref[...] = jnp.ones_like(aug_ref)

    feat = feat_ref[0].astype(jnp.float32)       # (D, TILE_T), upcast in-kernel
    labels_lane = lab_lane_ref[0]                # (1, TILE_T) int32
    labels_sub = lab_sub_ref[0]                  # (TILE_T, 1) int32
    centers_t = centers_t_ref[...]               # (D, C)

    # One-hot in both orientations, built on the VPU (no XLU transposes):
    #   onehot_ct (C, TILE_T) feeds the canonical gather, onehot_tc (TILE_T, C) the scatter.
    onehot_ct = (jax.lax.broadcasted_iota(jnp.int32, (c, tt), 0)
                 == labels_lane).astype(jnp.float32)
    onehot_tc = (jax.lax.broadcasted_iota(jnp.int32, (tt, c), 1)
                 == labels_sub).astype(jnp.float32)

    # Gather centers per token: canonical (D, C) @ (C, TILE_T) -> (D, TILE_T), lane-dense.
    centers_b = jnp.dot(centers_t, onehot_ct, preferred_element_type=jnp.float32)

    diff = centers_b - feat                      # (D, TILE_T), channel-major

    # Elementwise squared-error partial sums; the full reduction to a scalar is deferred
    # to the epilogue so per-tile work stays pure VPU FMA.
    loss_acc_ref[...] += diff * diff

    # Scatter-add + per-class counts fused into one canonical MXU matmul with K = TILE_T:
    # write diff into the pre-initialized augmented scratch (last row stays ones), then
    # (D+1, TILE_T) @ (TILE_T, C) -> (D+1, C); the last row accumulates counts.
    aug_ref[:d, :] = diff
    acc_ref[...] += jnp.dot(aug_ref[...], onehot_tc,
                            preferred_element_type=jnp.float32)

    @pl.when(jnp.logical_and(b == nb - 1, t == nt - 1))
    def _finalize():
        n_total = nb * nt * tt                   # static N = B * T (no padding tokens)
        loss_ref[...] = (jnp.sum(loss_acc_ref[...], axis=(0, 1), keepdims=True)
                         / jnp.float32(n_total * d))
        acc = acc_ref[...]                       # (D+1, C)
        counts = acc[d:d + 1, :]                 # (1, C)
        # One tiny (D, C) -> (C, D) transpose, once, in the epilogue.
        diff_ref[...] = (acc[:d, :] / jnp.maximum(counts, 1.0)).T


def _vmem_budget_bytes() -> int:
    # Per-chip VMEM: 128 MiB on v5e/v6e, 64 MiB on v7x. Use a conservative slice of it
    # for this kernel's live buffers so we also stay under the default scoped-VMEM
    # limits (16 MiB on v5e, 32 MiB on v6e/v7x) without touching vmem_limit_bytes.
    try:
        cap = pltpu.get_tpu_info().vmem_capacity_bytes
    except Exception:
        cap = 64 * 1024 * 1024
    return min(cap // 8, 8 * 1024 * 1024)


def _pick_tile_t(t_len: int, per_token_bytes: int) -> int:
    # Last block dim must be a multiple of 128 or equal the full extent.
    if t_len % 128 != 0:
        return t_len
    cap = max(128, _vmem_budget_bytes() // max(per_token_bytes, 1))
    best = 128
    for cand in range(128, t_len + 1, 128):
        if t_len % cand == 0 and cand <= cap:
            best = cand
    return best


def center_loss_forward(feature, label, centers):
    """feature: (B, D, T) (any float dtype), label: (B, T) int, centers: (C, D)."""
    B, D, T = feature.shape
    C = centers.shape[0]

    in_itemsize = jnp.dtype(feature.dtype).itemsize
    # Approximate live bytes per token: double-buffered feature tile, loss & aug scratch,
    # both one-hot orientations, and the (double-buffered, two-layout) labels.
    per_token_bytes = (2 * D * in_itemsize
                       + D * 4
                       + (D + 1) * 4
                       + 2 * C * 4
                       + 4 * 4)
    tile_t = _pick_tile_t(T, per_token_bytes)
    assert T % tile_t == 0
    grid = (B, T // tile_t)

    # Native-dtype feature (no HBM-doubling f32 copy); tiny label/centers reshapes only.
    lab_lane = label.reshape(B, 1, T).astype(jnp.int32)     # lane-dense labels
    lab_sub = label.reshape(B, T, 1).astype(jnp.int32)      # sublane-major labels
    cent_t = centers.astype(jnp.float32).T                  # (D, C), one tiny transpose

    n_tokens = B * T
    cost = pl.CostEstimate(
        flops=2 * n_tokens * C * D + 2 * n_tokens * C * (D + 1),
        transcendentals=0,
        bytes_accessed=(n_tokens * D * in_itemsize   # feature
                        + 2 * n_tokens * 4           # labels, two layouts
                        + C * D * 4                  # centers
                        + C * D * 4 + 4),            # outputs
    )

    loss, diff = pl.pallas_call(
        center_loss_kernel,
        out_shape=(
            jax.ShapeDtypeStruct((1, 1), jnp.float32),
            jax.ShapeDtypeStruct((C, D), jnp.float32),
        ),
        grid_spec=pltpu.PrefetchScalarGridSpec(
            num_scalar_prefetch=0,
            grid=grid,
            in_specs=[
                pl.BlockSpec((1, D, tile_t), lambda b, t: (b, 0, t)),
                pl.BlockSpec((1, 1, tile_t), lambda b, t: (b, 0, t)),
                pl.BlockSpec((1, tile_t, 1), lambda b, t: (b, t, 0)),
                pl.BlockSpec((D, C), lambda b, t: (0, 0)),
            ],
            out_specs=(
                pl.BlockSpec((1, 1), lambda b, t: (0, 0)),
                pl.BlockSpec((C, D), lambda b, t: (0, 0)),
            ),
            scratch_shapes=[
                pltpu.VMEM((D + 1, C), jnp.float32),        # fused diff_sum / counts
                pltpu.VMEM((D, tile_t), jnp.float32),       # squared-error accumulator
                pltpu.VMEM((D + 1, tile_t), jnp.float32),   # augmented [diff ; ones]
            ],
        ),
        compiler_params=pltpu.CompilerParams(
            # Outputs are resident accumulators across both axes -> must be "arbitrary".
            dimension_semantics=("arbitrary", "arbitrary"),
        ),
        cost_estimate=cost,
    )(feature, lab_lane, lab_sub, cent_t)

    return loss[0, 0], diff


def center_loss_reference(feature, label, centers):
    """Pure-JAX reference mirroring the PyTorch forward."""
    B, D, T = feature.shape
    feat = jnp.transpose(feature.astype(jnp.float32), (0, 2, 1)).reshape(-1, D)
    lab = label.reshape(-1)
    cb = centers[lab]
    loss = jnp.mean((feat - cb) ** 2)
    diff = cb - feat
    diff_sum = jnp.zeros_like(centers).at[lab].add(diff)
    counts = jnp.bincount(lab, length=centers.shape[0])
    diff_sum = diff_sum / jnp.maximum(counts, 1)[:, None]
    return loss, diff_sum


if __name__ == "__main__":
    key = jax.random.PRNGKey(0)
    k_feat, k_lab, k_cent = jax.random.split(key, 3)

    # Small shapes consistent with the module:
    # batch=2, feat_dim=32, time_step=8, subj_num (num_classes)=8
    B, D, T, C = 2, 32, 8, 8

    feature = jax.random.normal(k_feat, (B, D, T), dtype=jnp.float32)
    label = jax.random.randint(k_lab, (B, T), 0, C, dtype=jnp.int32)
    # Deterministic "parameter" init (torch.randn(num_classes, feat_dim) analogue).
    centers = jax.random.normal(k_cent, (C, D), dtype=jnp.float32)

    loss, diff = center_loss_forward(feature, label, centers)
    jax.block_until_ready((loss, diff))

    ref_loss, ref_diff = center_loss_reference(feature, label, centers)
    assert jnp.allclose(loss, ref_loss, atol=1e-5, rtol=1e-5), (loss, ref_loss)
    assert jnp.allclose(diff, ref_diff, atol=1e-5, rtol=1e-5)

    print("KERNEL_OK")
</pallas_src>

<mosaic_0001>
module attributes {stable_mosaic.version = 11 : i64} {
  func.func @center_loss_kernel(%arg0: i32, %arg1: i32, %arg2: memref<1x32x8xf32, #tpu.memory_space<vmem>>, %arg3: memref<1x1x8xi32, #tpu.memory_space<vmem>>, %arg4: memref<1x8x1xi32, #tpu.memory_space<vmem>>, %arg5: memref<32x8xf32, #tpu.memory_space<vmem>>, %arg6: memref<1x1xf32, #tpu.memory_space<vmem>>, %arg7: memref<8x32xf32, #tpu.memory_space<vmem>>, %arg8: memref<33x8xf32, #tpu.memory_space<vmem>>, %arg9: memref<32x8xf32, #tpu.memory_space<vmem>>, %arg10: memref<33x8xf32, #tpu.memory_space<vmem>>) attributes {dimension_semantics = [#tpu.dimension_semantics<arbitrary>, #tpu.dimension_semantics<arbitrary>], iteration_bounds = array<i64: 2, 1>, scalar_prefetch = 0 : i64, scratch_operands = 3 : i64, tpu.core_type = #tpu.core_type<tc>, window_params = [{transform_indices = @transform_0, window_bounds = array<i64: 1, 32, 8>}, {transform_indices = @transform_1, window_bounds = array<i64: 1, 1, 8>}, {transform_indices = @transform_2, window_bounds = array<i64: 1, 8, 1>}, {pipeline_mode = #tpu.pipeline_mode<synchronous>, transform_indices = @transform_3, window_bounds = array<i64: 32, 8>}, {pipeline_mode = #tpu.pipeline_mode<synchronous>, transform_indices = @transform_4, window_bounds = array<i64: 1, 1>}, {pipeline_mode = #tpu.pipeline_mode<synchronous>, transform_indices = @transform_5, window_bounds = array<i64: 8, 32>}]} {
    %c0_i32 = arith.constant 0 : i32
    %0 = arith.cmpi eq, %arg0, %c0_i32 : i32
    %c0_i32_0 = arith.constant 0 : i32
    %1 = arith.cmpi eq, %arg1, %c0_i32_0 : i32
    %2 = arith.andi %0, %1 : i1
    %3 = arith.extui %2 : i1 to i32
    %c0_i32_1 = arith.constant 0 : i32
    %4 = arith.cmpi ne, %3, %c0_i32_1 : i32
    scf.if %4 {
      %cst_27 = arith.constant 0.000000e+00 : f32
      %39 = vector.broadcast %cst_27 : f32 to vector<33x8xf32>
      %c0_28 = arith.constant 0 : index
      %c0_29 = arith.constant 0 : index
      %40 = vector.load %arg8[%c0_28, %c0_29] : memref<33x8xf32, #tpu.memory_space<vmem>>, vector<33x8xf32>
      tpu.vector_store %arg8[%c0_28, %c0_29], %39 {strides = array<i32>} : memref<33x8xf32, #tpu.memory_space<vmem>>, vector<33x8xf32>,
      %cst_30 = arith.constant 0.000000e+00 : f32
      %41 = vector.broadcast %cst_30 : f32 to vector<32x8xf32>
      %c0_31 = arith.constant 0 : index
      %c0_32 = arith.constant 0 : index
      %42 = vector.load %arg9[%c0_31, %c0_32] : memref<32x8xf32, #tpu.memory_space<vmem>>, vector<32x8xf32>
      tpu.vector_store %arg9[%c0_31, %c0_32], %41 {strides = array<i32>} : memref<32x8xf32, #tpu.memory_space<vmem>>, vector<32x8xf32>,
      %cst_33 = arith.constant 1.000000e+00 : f32
      %43 = vector.broadcast %cst_33 : f32 to vector<33x8xf32>
      %c0_34 = arith.constant 0 : index
      %c0_35 = arith.constant 0 : index
      %44 = vector.load %arg10[%c0_34, %c0_35] : memref<33x8xf32, #tpu.memory_space<vmem>>, vector<33x8xf32>
      tpu.vector_store %arg10[%c0_34, %c0_35], %43 {strides = array<i32>} : memref<33x8xf32, #tpu.memory_space<vmem>>, vector<33x8xf32>,
    } else {
    }
    %c0 = arith.constant 0 : index
    %c0_2 = arith.constant 0 : index
    %c0_3 = arith.constant 0 : index
    %5 = vector.load %arg2[%c0, %c0_2, %c0_3] : memref<1x32x8xf32, #tpu.memory_space<vmem>>, vector<1x32x8xf32>
    %6 = vector.shape_cast %5 : vector<1x32x8xf32> to vector<32x8xf32>
    %c0_4 = arith.constant 0 : index
    %c0_5 = arith.constant 0 : index
    %c0_6 = arith.constant 0 : index
    %7 = vector.load %arg3[%c0_4, %c0_5, %c0_6] : memref<1x1x8xi32, #tpu.memory_space<vmem>>, vector<1x1x8xi32>
    %8 = vector.shape_cast %7 : vector<1x1x8xi32> to vector<1x8xi32>
    %c0_7 = arith.constant 0 : index
    %c0_8 = arith.constant 0 : index
    %c0_9 = arith.constant 0 : index
    %9 = vector.load %arg4[%c0_7, %c0_8, %c0_9] : memref<1x8x1xi32, #tpu.memory_space<vmem>>, vector<1x8x1xi32>
    %10 = vector.shape_cast %9 : vector<1x8x1xi32> to vector<8x1xi32>
    %c0_10 = arith.constant 0 : index
    %c0_11 = arith.constant 0 : index
    %11 = vector.load %arg5[%c0_10, %c0_11] : memref<32x8xf32, #tpu.memory_space<vmem>>, vector<32x8xf32>
    %12 = tpu.iota {dimensions = array<i32: 0>} : vector<8x8xi32>
    %13 = vector.broadcast %8 : vector<1x8xi32> to vector<8x8xi32>
    %14 = arith.cmpi eq, %12, %13 : vector<8x8xi32>
    %15 = arith.extui %14 : vector<8x8xi1> to vector<8x8xi32>
    %16 = arith.sitofp %15 : vector<8x8xi32> to vector<8x8xf32>
    %17 = tpu.iota {dimensions = array<i32: 1>} : vector<8x8xi32>
    %18 = vector.broadcast %10 : vector<8x1xi32> to vector<8x8xi32>
    %19 = arith.cmpi eq, %17, %18 : vector<8x8xi32>
    %20 = arith.extui %19 : vector<8x8xi1> to vector<8x8xi32>
    %21 = arith.sitofp %20 : vector<8x8xi32> to vector<8x8xf32>
    %cst = arith.constant dense<0.000000e+00> : vector<32x8xf32>
    %22 = tpu.matmul %11, %16, %cst {dimension_numbers = #tpu.dot_dimension_numbers<[1], [0], [0], [1], [0, 0, 1, 1], [], []>} : vector<32x8xf32>, vector<8x8xf32>, vector<32x8xf32> -> vector<32x8xf32>
    %23 = arith.subf %22, %6 : vector<32x8xf32>
    %c0_12 = arith.constant 0 : index
    %c0_13 = arith.constant 0 : index
    %24 = vector.load %arg9[%c0_12, %c0_13] : memref<32x8xf32, #tpu.memory_space<vmem>>, vector<32x8xf32>
    %25 = arith.mulf %23, %23 : vector<32x8xf32>
    %26 = arith.addf %24, %25 : vector<32x8xf32>
    %c0_14 = arith.constant 0 : index
    %c0_15 = arith.constant 0 : index
    %27 = vector.load %arg9[%c0_14, %c0_15] : memref<32x8xf32, #tpu.memory_space<vmem>>, vector<32x8xf32>
    tpu.vector_store %arg9[%c0_14, %c0_15], %26 {strides = array<i32>} : memref<32x8xf32, #tpu.memory_space<vmem>>, vector<32x8xf32>,
    %c0_16 = arith.constant 0 : index
    %c0_17 = arith.constant 0 : index
    %28 = vector.load %arg10[%c0_16, %c0_17] : memref<33x8xf32, #tpu.memory_space<vmem>>, vector<32x8xf32>
    tpu.vector_store %arg10[%c0_16, %c0_17], %23 {strides = array<i32>} : memref<33x8xf32, #tpu.memory_space<vmem>>, vector<32x8xf32>,
    %c0_18 = arith.constant 0 : index
    %c0_19 = arith.constant 0 : index
    %29 = vector.load %arg8[%c0_18, %c0_19] : memref<33x8xf32, #tpu.memory_space<vmem>>, vector<33x8xf32>
    %c0_20 = arith.constant 0 : index
    %c0_21 = arith.constant 0 : index
    %30 = vector.load %arg10[%c0_20, %c0_21] : memref<33x8xf32, #tpu.memory_space<vmem>>, vector<33x8xf32>
    %cst_22 = arith.constant dense<0.000000e+00> : vector<33x8xf32>
    %31 = tpu.matmul %30, %21, %cst_22 {dimension_numbers = #tpu.dot_dimension_numbers<[1], [0], [0], [1], [0, 0, 1, 1], [], []>} : vector<33x8xf32>, vector<8x8xf32>, vector<33x8xf32> -> vector<33x8xf32>
    %32 = arith.addf %29, %31 : vector<33x8xf32>
    %c0_23 = arith.constant 0 : index
    %c0_24 = arith.constant 0 : index
    %33 = vector.load %arg8[%c0_23, %c0_24] : memref<33x8xf32, #tpu.memory_space<vmem>>, vector<33x8xf32>
    tpu.vector_store %arg8[%c0_23, %c0_24], %32 {strides = array<i32>} : memref<33x8xf32, #tpu.memory_space<vmem>>, vector<33x8xf32>,
    %c1_i32 = arith.constant 1 : i32
    %34 = arith.cmpi eq, %arg0, %c1_i32 : i32
    %c0_i32_25 = arith.constant 0 : i32
    %35 = arith.cmpi eq, %arg1, %c0_i32_25 : i32
    %36 = arith.andi %34, %35 : i1
    %37 = arith.extui %36 : i1 to i32
    %c0_i32_26 = arith.constant 0 : i32
    %38 = arith.cmpi ne, %37, %c0_i32_26 : i32
    scf.if %38 {
      %c0_27 = arith.constant 0 : index
      %c0_28 = arith.constant 0 : index
      %39 = vector.load %arg9[%c0_27, %c0_28] : memref<32x8xf32, #tpu.memory_space<vmem>>, vector<32x8xf32>
      %40 = vector.shape_cast %39 : vector<32x8xf32> to vector<1x32x8xf32>
      %cst_29 = arith.constant dense<0.000000e+00> : vector<1xf32>
      %41 = vector.multi_reduction <add>, %40, %cst_29 [1, 2] : vector<1x32x8xf32> to vector<1xf32>
      %42 = vector.shape_cast %41 : vector<1xf32> to vector<1x1x1xf32>
      %43 = vector.extract %42[0, 0, 0] : f32 from vector<1x1x1xf32>
      %44 = vector.broadcast %43 : f32 to vector<1x1xf32>
      %cst_30 = arith.constant 5.120000e+02 : f32
      %45 = vector.broadcast %cst_30 : f32 to vector<1x1xf32>
      %46 = arith.divf %44, %45 : vector<1x1xf32>
      %c0_31 = arith.constant 0 : index
      %c0_32 = arith.constant 0 : index
      %47 = vector.load %arg6[%c0_31, %c0_32] : memref<1x1xf32, #tpu.memory_space<vmem>>, vector<1x1xf32>
      tpu.vector_store %arg6[%c0_31, %c0_32], %46 {strides = array<i32>} : memref<1x1xf32, #tpu.memory_space<vmem>>, vector<1x1xf32>,
      %c0_33 = arith.constant 0 : index
      %c0_34 = arith.constant 0 : index
      %48 = vector.load %arg8[%c0_33, %c0_34] : memref<33x8xf32, #tpu.memory_space<vmem>>, vector<33x8xf32>
      %49 = vector.extract_strided_slice %48 {offsets = [32, 0], sizes = [1, 8], strides = [1, 1]} : vector<33x8xf32> to vector<1x8xf32>
      %50 = vector.extract_strided_slice %48 {offsets = [0, 0], sizes = [32, 8], strides = [1, 1]} : vector<33x8xf32> to vector<32x8xf32>
      %cst_35 = arith.constant 1.000000e+00 : f32
      %51 = vector.broadcast %cst_35 : f32 to vector<1x8xf32>
      %52 = arith.maximumf %49, %51 : vector<1x8xf32>
      %53 = vector.broadcast %52 : vector<1x8xf32> to vector<32x8xf32>
      %54 = arith.divf %50, %53 : vector<32x8xf32>
      %55 = tpu.transpose %54, [1, 0] : vector<32x8xf32> -> vector<8x32xf32>
      %c0_36 = arith.constant 0 : index
      %c0_37 = arith.constant 0 : index
      %56 = vector.load %arg7[%c0_36, %c0_37] : memref<8x32xf32, #tpu.memory_space<vmem>>, vector<8x32xf32>
      tpu.vector_store %arg7[%c0_36, %c0_37], %55 {strides = array<i32>} : memref<8x32xf32, #tpu.memory_space<vmem>>, vector<8x32xf32>,
    } else {
    }
    return
  }
  func.func @transform_0(%arg0: i32, %arg1: i32) -> (i32, i32, i32) {
    %c0_i32 = arith.constant 0 : i32
    %c0_i32_0 = arith.constant 0 : i32
    return %arg0, %c0_i32, %arg1 : i32, i32, i32
  }
  func.func @transform_1(%arg0: i32, %arg1: i32) -> (i32, i32, i32) {
    %c0_i32 = arith.constant 0 : i32
    %c0_i32_0 = arith.constant 0 : i32
    return %arg0, %c0_i32, %arg1 : i32, i32, i32
  }
  func.func @transform_2(%arg0: i32, %arg1: i32) -> (i32, i32, i32) {
    %c0_i32 = arith.constant 0 : i32
    %c0_i32_0 = arith.constant 0 : i32
    return %arg0, %arg1, %c0_i32 : i32, i32, i32
  }
  func.func @transform_3(%arg0: i32, %arg1: i32) -> (i32, i32) {
    %c0_i32 = arith.constant 0 : i32
    %c0_i32_0 = arith.constant 0 : i32
    %c0_i32_1 = arith.constant 0 : i32
    return %c0_i32, %c0_i32_0 : i32, i32
  }
  func.func @transform_4(%arg0: i32, %arg1: i32) -> (i32, i32) {
    %c0_i32 = arith.constant 0 : i32
    %c0_i32_0 = arith.constant 0 : i32
    %c0_i32_1 = arith.constant 0 : i32
    return %c0_i32, %c0_i32_0 : i32, i32
  }
  func.func @transform_5(%arg0: i32, %arg1: i32) -> (i32, i32) {
    %c0_i32 = arith.constant 0 : i32
    %c0_i32_0 = arith.constant 0 : i32
    %c0_i32_1 = arith.constant 0 : i32
    return %c0_i32, %c0_i32_0 : i32, i32
  }
}

</mosaic_0001>

<bundles_post_ra>
// kernel: tpu_custom_call.1
= control target key start
LH: loop header
LB: loop body
LE: loop exit
PB: predicated region body
PF: predicated region fallthrough
CT: control target
= control target key end

     0   :  { %11 = vsyncpa [#allocation6], 0  ;;  %s1154_s0 = inlined_call_operand.vmem [shape: f32[2,32,8], index: 0, kind: input, shape index: {}]   ;;  %s1155_s1 = inlined_call_operand.vmem [shape: s32[2,1,8], index: 1, kind: input, shape index: {}]   ;;  %s1156_s2 = inlined_call_operand.vmem [shape: s32[2,8,1], index: 2, kind: input, shape index: {}]   ;;  %s1157_s3 = inlined_call_operand.vmem [shape: f32[32,8], index: 3, kind: input, shape index: {}]   ;;  %s1158_s4 = inlined_call_operand.hbm [shape: f32[1,1], index: 4, kind: output, shape index: {0}]   ;;  %s1159_s5 = inlined_call_operand.hbm [shape: f32[8,32], index: 5, kind: output, shape index: {1}]  }
   0x1   :  { %12 = vsyncpa [#allocation8], 0  ;;  %s1010_s18 = smov 0   ;;  %s1012_s19 = smov 0  }
   0x2   :  { %s1014_s20 = smov 0  }
   0x3 LB: > { %s772_s21 = sadd.s32 4294967295, %s970_s20   ;;  %s30_s22 = sadd.s32 1, %s966_s19  ;;  %s970_s20 = sphi %s1014_s20, %s18_s20   ;;  %s966_s19 = sphi %s1012_s19, %s1162_s19   ;;  %s962_s18 = sphi %s1010_s18, %s1161_s18  }
   0x4   : > { %p32_p0 = scmp.ge.s32.totalorder %s30_s22, 2  ;;  %p775_p1 = scmp.ge.s32.totalorder %s970_s20, 1 }
   0x5   : > { %p226_p2 = scmp.lt.s32.totalorder %s970_s20, 3 }
   0x6   : > { %s1164_s22 = smov (%p32_p0, %s30_s22), 0 }
   0x7   : > { %p227_p3 = pnand %p775_p1, %p226_p2 }
   0x8   : > { %p265_p4 = scmp.lt.s32.totalorder (!%p227_p3), %s962_s18, 1  ;;  %p286_p5 = scmp.eq.s32.totalorder (!%p227_p3), %s962_s18, 0 }
   0x9   : > { %230 = sbr.rel (%p227_p3) target bundleno = 623 (0x26f), region = 36 }
   0xe   : > { %s1034_s23 = scalar_select %p265_p4, %s962_s18, 1  ;;  %vm292_vm0 = vcmask (%p286_p5), 64512   ;;  %vm297_vm1 = vcmask (%p286_p5), 57344   ;;  %v972_v0 = vmov (%p286_p5), 0.0   ;;  %v973_v1 = vmov (%p286_p5), 1.0  }
   0xf   : > { %291 = sbr.rel (!%p286_p5) target bundleno = 22 (0x16), region = 40  ;;  %293 = vst.msk [vmem:[#allocation2] sm:$0xff] (%p286_p5), %vm292_vm0, %v972_v0  ;;  %294 = vst.msk [vmem:[#allocation2 + $0x8] sm:$0xff] (%p286_p5), %vm292_vm0, %v972_v0 }
  0x10   : > { %s801_s24 = sshll.u32 %s1034_s23, 5  ;;  %s278_s27 = scalar_lea.vmem %s1155_s1, %s1034_s23  ;;  %295 = vst.msk [vmem:[#allocation2 + $0x10] sm:$0xff] (%p286_p5), %vm292_vm0, %v972_v0  ;;  %296 = vst.msk [vmem:[#allocation2 + $0x18] sm:$0xff] (%p286_p5), %vm292_vm0, %v972_v0 }
  0x11   : > { %s1044_s30 = scalar_lea.vmem %s1154_s0, %s801_s24  ;;  %s778_s6 = sshll.u32 %s1034_s23, 3  ;;  %299 = vst.msk [vmem:[#allocation3] sm:$0xff] (%p286_p5), %vm292_vm0, %v972_v0  ;;  %300 = vst.msk [vmem:[#allocation3 + $0x8] sm:$0xff] (%p286_p5), %vm292_vm0, %v972_v0 }
  0x12   : > { %s285_s9 = scalar_lea.vmem %s1156_s2, %s778_s6  ;;  %301 = vst.msk [vmem:[#allocation3 + $0x10] sm:$0xff] (%p286_p5), %vm292_vm0, %v972_v0  ;;  %302 = vst.msk [vmem:[#allocation3 + $0x18] sm:$0xff] (%p286_p5), %vm292_vm0, %v972_v0 }
  0x13   : > { %298 = vst.msk [vmem:[#allocation2 + $0x20] sm:$0x1] (%p286_p5), %vm297_vm1, %v972_v0  ;;  %307 = vst.msk [vmem:[#allocation4 + $0x20] sm:$0x1] (%p286_p5), %vm297_vm1, %v973_v1 }
  0x14   : > { %303 = vst.msk [vmem:[#allocation4] sm:$0xff] %vm292_vm0, %v973_v1  ;;  %304 = vst.msk [vmem:[#allocation4 + $0x8] sm:$0xff] %vm292_vm0, %v973_v1 }
  0x15   : > { %305 = vst.msk [vmem:[#allocation4 + $0x10] sm:$0xff] %vm292_vm0, %v973_v1  ;;  %306 = vst.msk [vmem:[#allocation4 + $0x18] sm:$0xff] %vm292_vm0, %v973_v1 }
  0x16 PF: > { %v318_v2 = vlaneseq  ;;  %v314_v3 = vld [vmem:[%s1157_s3] sm:$0xff]  ;;  %vm335_vm2 = vcmask 64512   ;;  %v974_v7 = vmov 0   ;;  %v315_v8 = vld [vmem:[%s1157_s3 + $0x8] sm:$0xff]  ;;  %v975_v9 = vmov 1.0   ;;  %v316_v10 = vld [vmem:[%s1157_s3 + $0x10] sm:$0xff] }
  0x17   : > { %v780_v4 = vld [vmem:[%s278_s27] ss:$0 sm:$0xff]  ;;  %817 = vmatprep.mubr.msk.f32.mxu0 %vm335_vm2, %v314_v3  ;;  %889 = vset.pattern.permute.xlu0 %v974_v7  ;;  %v317_v11 = vld [vmem:[%s1157_s3 + $0x18] sm:$0xff]  ;;  %v976_v12 = vmov 0.0   ;;  %vm977_vm4 = vmmov 0   ;;  %v309_v15 = vld [vmem:[%s1044_s30 + $0x8] sm:$0xff] }
  0x18   : > { %v313_v5 = vld [vmem:[%s285_s9] sm:$0xff]  ;;  %v1068_v6 = vshrl.u32 %v318_v2, 7  ;;  %840 = vmatprep.subr.mxu1 %v976_v12  ;;  %828 = vmatprep.mubr.msk.f32.mxu1 %vm977_vm4, %v976_v12  ;;  %v328_v13 = vand.u32 127, %v318_v2  ;;  %v311_v21 = vld [vmem:[%s1044_s30 + $0x18] sm:$0xff]  ;;  %v310_v26 = vld [vmem:[%s1044_s30 + $0x10] sm:$0xff]  ;;  %p583_p6 = scmp.eq.s32.totalorder %s962_s18, 1 }
  0x19   : > { %330 = vperm.xlu0 %889, %v313_v5   ;;  %v308_v17 = vld [vmem:[%s1044_s30] sm:$0xff]  ;;  %v458_v44 = vld [vmem:[#allocation2 + $0x8] sm:$0xff]  ;;  %v459_v52 = vld [vmem:[#allocation2 + $0x10] sm:$0xff]  ;;  %vm581_vm6 = vcmask 57344   ;;  %vm660_vm7 = vcmask (%p583_p6), 261120   ;;  %vm611_vm8 = vcmask (%p583_p6), 0  }
  0x1a   : > { %vm324_vm3 = vcmp.eq.s32.totalorder %v1068_v6, %v780_v4  ;;  %v438_v19 = vld [vmem:[#allocation3 + $0x8] sm:$0xff]  ;;  %v437_v24 = vld [vmem:[#allocation3] sm:$0xff]  ;;  %v457_v46 = vld [vmem:[#allocation2] sm:$0xff] }
  0x1b   : > { %815 = vmatprep.subr.msk.mxu0 %vm324_vm3, %v975_v9  ;;  %v440_v30 = vld [vmem:[#allocation3 + $0x18] sm:$0xff]  ;;  %v439_v35 = vld [vmem:[#allocation3 + $0x10] sm:$0xff] }
  0x1c   : > { %816 = vmatpush3.msk.msra.mxu0 %vm324_vm3, %v975_v9  ;;  %v466_v43 = vld [vmem:[#allocation4 + $0x20] sm:$0x1]  ;;  %v460_v56 = vld [vmem:[#allocation2 + $0x18] sm:$0xff]  ;;  %v461_v60 = vld [vmem:[#allocation2 + $0x20] sm:$0x1] }
  0x1d   : > { %818 = vmatmul.mubr.msk.f32.vlgmr.msra.gmra.mxu0 %vm335_vm2, %v315_v8  ;;  %823 = vmatprep.subr.mxu0 %v976_v12 }
  0x1e   : > { %820 = vmatprep.mubr.msk.f32.mxu0 %vm335_vm2, %v316_v10 }
  0x21   : > { %821 = vmatmul.mubr.msk.f32.gmra.mxu0 %vm335_vm2, %v317_v11 }
  0x22   : > { %825 = vmatprep.mubr.msk.f32.mxu0 %vm977_vm4, %v976_v12 }
  0x94   : > { %v331_v14 = vpop.permute.xlu0 %330 }
  0x95   : > { %vm332_vm5 = vcmp.eq.s32.totalorder %v328_v13, %v331_v14  ;;  %v621_v14 = vsub.s32 (%p583_p6), 0, %v1068_v6 }
  0x96   : > { %841 = vmatpush3.msk.msra.mxu1 %vm332_vm5, %v975_v9  ;;  %824 = vmatpush3.msk.msra.mxu0 %vm332_vm5, %v975_v9 }
  0xdd   : > { %v819_v16 = vpop.f32.mrf.mxu0 }
  0xde   : > { %v434_v18 = vsub.f32 %v819_v16, %v309_v15 }
  0xdf   : > { %v414_v20 = vpop.f32.mrf.mxu0 }
  0xe0   : > { %v442_v22 = vmul.f32 %v434_v18, %v434_v18  ;;  %454 = vst.msk [vmem:[#allocation4 + $0x8] sm:$0xff] %vm335_vm2, %v434_v18  ;;  %v433_v23 = vsub.f32 %v414_v20, %v308_v17 }
  0xe1   : > { %v822_v25 = vpop.f32.mrf.mxu0 }
  0xe2   : > { %v446_v27 = vadd.f32 %v442_v22, %v438_v19  ;;  %v441_v28 = vmul.f32 %v433_v23, %v433_v23  ;;  %453 = vst.msk [vmem:[#allocation4] sm:$0xff] %vm335_vm2, %v433_v23  ;;  %v436_v29 = vsub.f32 %v822_v25, %v311_v21 }
  0xe3   : > { %v424_v31 = vpop.f32.mrf.mxu0 }
  0xe4   : > { %450 = vst.msk [vmem:[#allocation3 + $0x8] sm:$0xff] %vm335_vm2, %v446_v27  ;;  %v445_v32 = vadd.f32 %v441_v28, %v437_v24  ;;  %v444_v33 = vmul.f32 %v436_v29, %v436_v29  ;;  %456 = vst.msk [vmem:[#allocation4 + $0x18] sm:$0xff] %vm335_vm2, %v436_v29  ;;  %v435_v34 = vsub.f32 %v424_v31, %v310_v26 }
  0xe6   : > { %449 = vst.msk [vmem:[#allocation3] sm:$0xff] %vm335_vm2, %v445_v32  ;;  %v448_v36 = vadd.f32 %v444_v33, %v440_v30  ;;  %v443_v37 = vmul.f32 %v435_v34, %v435_v34  ;;  %455 = vst.msk [vmem:[#allocation4 + $0x10] sm:$0xff] %vm335_vm2, %v435_v34 }
  0xe7   : > { %v463_v38 = vld [vmem:[#allocation4 + $0x8] sm:$0xff] }
  0xe8   : > { %452 = vst.msk [vmem:[#allocation3 + $0x18] sm:$0xff] %vm335_vm2, %v448_v36  ;;  %v447_v39 = vadd.f32 %v443_v37, %v439_v35  ;;  %829 = vmatmul.mubr.msk.f32.vlgmr.msra.gmra.mxu1 %vm335_vm2, %v463_v38 }
  0xe9   : > { %v462_v40 = vld [vmem:[#allocation4] sm:$0xff]  ;;  %831 = vmatprep.mubr.msk.f32.mxu1 %vm977_vm4, %v976_v12 }
  0xea   : > { %451 = vst.msk [vmem:[#allocation3 + $0x10] sm:$0xff] %vm335_vm2, %v447_v39  ;;  %826 = vmatmul.mubr.msk.f32.vlgmr.msra.gmra.mxu0 %vm335_vm2, %v462_v40 }
  0xeb   : > { %v465_v42 = vld [vmem:[#allocation4 + $0x18] sm:$0xff]  ;;  %v589_v1 = vld [vmem:[#allocation3 + $0x8] sm:$0xff] (%p583_p6) }
  0xec   : > { %v593_v5 = vsel (%p583_p6), %vm335_vm2, %v589_v1, 0.0 }
  0xed   : > { %v464_v41 = vld [vmem:[#allocation4 + $0x10] sm:$0xff]  ;;  %v588_v0 = vld [vmem:[#allocation3] sm:$0xff] (%p583_p6) }
  0xee   : > { %832 = vmatmul.mubr.msk.f32.gmra.mxu1 %vm335_vm2, %v464_v41  ;;  %v592_v4 = vsel (%p583_p6), %vm335_vm2, %v588_v0, 0.0 }
  0xef   : > { %834 = vmatprep.mubr.msk.f32.mxu1 %vm977_vm4, %v976_v12  ;;  %v591_v3 = vld [vmem:[#allocation3 + $0x18] sm:$0xff] (%p583_p6)  ;;  %v594_v8 = vadd.f32 (%p583_p6), %v593_v5, %v592_v4 }
  0xf0   : > { %v597_v9 = vsel (%p583_p6), %vm335_vm2, %v591_v3, 0.0 }
  0xf1   : > { %v590_v2 = vld [vmem:[#allocation3 + $0x10] sm:$0xff] (%p583_p6) }
  0xf2   : > { %835 = vmatmul.mubr.msk.f32.gmra.mxu1 %vm335_vm2, %v465_v42  ;;  %v595_v7 = vsel (%p583_p6), %vm335_vm2, %v590_v2, 0.0 }
  0xf3   : > { %837 = vmatprep.mubr.msk.f32.mxu1 %vm977_vm4, %v976_v12  ;;  %v596_v10 = vadd.f32 (%p583_p6), %v595_v7, %v594_v8 }
  0xf5   : > { %v598_v11 = vadd.f32 (%p583_p6), %v597_v9, %v596_v10 }
  0xf6   : > { %838 = vmatmul.mubr.msk.f32.gmra.mxu1 %vm335_vm2, %v466_v43 }
  0xf7   : > { %599 = vadd.xlane.f32.xlu0 (%p583_p6), %v598_v11 }
 0x180   : > { %v600_v25 = vpop.xlane.xlu0 (%p583_p6), %599 }
 0x181   : > { %v601_v26 = vrot.slane (%p583_p6), %v600_v25, 4 }
 0x183   : > { %v602_v27 = vadd.f32 (%p583_p6), %v601_v26, %v600_v25 }
 0x185   : > { %v603_v28 = vrot.slane (%p583_p6), %v602_v27, 2 }
 0x187   : > { %v604_v6 = vadd.f32 (%p583_p6), %v603_v28, %v602_v27 }
 0x189   : > { %v605_v29 = vrot.slane (%p583_p6), %v604_v6, 1 }
 0x18b   : > { %v606_v30 = vadd.f32 (%p583_p6), %v605_v29, %v604_v6 }
 0x18d   : > { %842 = vpush (%p583_p6), %v606_v30 }
 0x1a8   : > { %v553_v45 = vpop.f32.mrf.mxu1 }
 0x1a9   : > { %v573_v47 = vadd.f32 %v553_v45, %v458_v44 }
 0x1aa   : > { %v548_v48 = vpop.f32.mrf.mxu0  ;;  %v830_v49 = vpop.f32.mrf.mxu1 }
 0x1ab   : > { %578 = vst.msk [vmem:[#allocation2 + $0x8] sm:$0xff] %vm335_vm2, %v573_v47  ;;  %v572_v50 = vadd.f32 %v548_v48, %v457_v46 }
 0x1ac   : > { %v827_v51 = vpop.f32.mrf.mxu0 }
 0x1ad   : > { %577 = vst.msk [vmem:[#allocation2] sm:$0xff] %vm335_vm2, %v572_v50 }
 0x1ae   : > { %v558_v53 = vpop.f32.mrf.mxu1 }
 0x1af   : > { %v574_v54 = vadd.f32 %v558_v53, %v459_v52 }
 0x1b0   : > { %v833_v55 = vpop.f32.mrf.mxu1 }
 0x1b1   : > { %579 = vst.msk [vmem:[#allocation2 + $0x10] sm:$0xff] %vm335_vm2, %v574_v54 }
 0x1b2   : > { %v563_v57 = vpop.f32.mrf.mxu1  ;;  %v614_v19 = vld [vmem:[#allocation2 + $0x8] sm:$0xff] (%p583_p6) }
 0x1b3   : > { %v575_v58 = vadd.f32 %v563_v57, %v460_v56 }
 0x1b4   : > { %v836_v59 = vpop.f32.mrf.mxu1  ;;  %v613_v17 = vld [vmem:[#allocation2] sm:$0xff] (%p583_p6) }
 0x1b5   : > { %580 = vst.msk [vmem:[#allocation2 + $0x18] sm:$0xff] %vm335_vm2, %v575_v58  ;;  %587 = sbr.rel (!%p583_p6) target bundleno = 595 (0x253), region = 44 }
 0x1b6   : > { %v568_v61 = vpop.f32.mrf.mxu1 }
 0x1b7   : > { %v576_v62 = vadd.f32 %v568_v61, %v461_v60 }
 0x1b8   : > { %v839_v63 = vpop.f32.mrf.mxu1  ;;  %v615_v21 = vld [vmem:[#allocation2 + $0x10] sm:$0xff] (%p583_p6) }
 0x1b9   : > { %582 = vst.msk [vmem:[#allocation2 + $0x20] sm:$0x1] %vm581_vm6, %v576_v62 }
 0x1bc   : > { %v616_v23 = vld [vmem:[#allocation2 + $0x18] sm:$0xff] }
 0x1be   : > { %s843_s18 = spop %842 }
 0x1bf   : > { %v608_v32 = vstv %s843_s18 }
 0x1c0   : > { %v617_v12 = vld [vmem:[#allocation2 + $0x20] sm:$0x1]  ;;  %v610_v33 = vmul.f32 0.001953125, %v608_v32 }
 0x1c1   : > { %v618_v13 = vmax.f32 %v617_v12, 1.0 }
 0x1c2   : > { %612 = vst.msk [vmem:[#allocation5] sm:$0x1] %vm611_vm8, %v610_v33 }
 0x1c3   : > { %v622_v15 = vrot.slane %v618_v13, %v621_v14 }
 0x1c5   : > { %890 = vrcp.f32 %v622_v15 }
 0x1d2   : > { %v891_v16 = vpop.eup %890 }
 0x1d3   : > { %v624_v18 = vmul.f32 %v891_v16, %v613_v17  ;;  %v625_v20 = vmul.f32 %v891_v16, %v614_v19  ;;  %v626_v22 = vmul.f32 %v891_v16, %v615_v21  ;;  %v627_v24 = vmul.f32 %v891_v16, %v616_v23 }
 0x1d5   : > { %628 = vxpose.xlu0.b32.start [1/4] (short) (narrow) %v624_v18, 8 }
 0x1d9   : > { %629 = vxpose.xlu0.b32.cont [2/4] (short) (narrow) %v625_v20, 8 }
 0x1dd   : > { %630 = vxpose.xlu0.b32.cont [3/4] (short) (narrow) %v626_v22, 8 }
 0x1e1   : > { %631 = vxpose.xlu0.b32.end [4/4] (short) (narrow) %v627_v24, 8 }
 0x251   : > { %v644_v31 = vpop.trf.xlu0 }
 0x252   : > { %661 = vst.msk [vmem:[#allocation7] sm:$0xff] %vm660_vm7, %v644_v31 }
 0x253 PF: > { %p1119_p7 = scmp.eq.s32.totalorder %s772_s21, 1  ;;  %s978_s24 = smov [#allocation5]  }
 0x254   : > { %s669_s25 = sshll.u32 %s978_s24, 4  ;;  %s979_s26 = smov [#allocation7]   ;;  %s670_s25 = int_to_ptr.vmem [resolvable:$true] %s669_s25 }
 0x255   : > { %s680_s27 = sshll.u32 %s979_s26, 4  ;;  %s892_s28 = scalar_lea.vmem %s670_s25, 16  ;;  %s681_s27 = int_to_ptr.vmem [resolvable:$true] %s680_s27 }
 0x256   : > { %p893_p8 = scmp.ne.s32.totalorder %s670_s25, %s892_s28  ;;  %s898_s29 = scalar_lea.vmem %s670_s25, 32 }
 0x257   : > { %p899_p11 = scmp.lt.s32.totalorder %s670_s25, %s670_s25  ;;  %p900_p12 = scmp.lt.s32.totalorder %s898_s29, %s892_s28 }
 0x258   : > { %p894_p9 = pnand %p893_p8, %p1119_p7 }
 0x259   : > { %p901_p13 = por %p900_p12, %p899_p11 }
 0x25a   : > { %p895_p10 = pneg %p894_p9 }
 0x25c   : > { %p902_p0 = pnand %p901_p13, %p895_p10 }
 0x25e   : > { %905 = shalt.err (!%p902_p0)
}
 0x25f   : > { %845 = dma.vmem_to_hbm [thread:$0]  (%p1119_p7), %s670_s25, 16, %s1158_s4, [#allocation6]  }
 0x260   : > { %s916_s6 = scalar_lea.vmem %s681_s27, 128  ;;  %p923_p4 = scmp.lt.s32.totalorder %s681_s27, %s681_s27 }
 0x261   : > { %p917_p1 = scmp.ne.s32.totalorder %s681_s27, %s916_s6  ;;  %p924_p5 = scmp.lt.s32.totalorder %s916_s6, %s916_s6 }
 0x263   : > { %p918_p2 = pnand %p917_p1, %p1119_p7  ;;  %p925_p6 = por %p924_p5, %p923_p4 }
 0x265   : > { %p919_p3 = pneg %p918_p2 }
 0x267   : > { %p926_p8 = pnand %p925_p6, %p919_p3 }
 0x269   : > { %929 = shalt.err (!%p926_p8)
}
 0x26a   : > { %847 = dma.vmem_to_hbm [thread:$0]  (%p1119_p7), %s681_s27, 128, %s1159_s5, [#allocation8]  }
 0x26b   : > { %953 = dma.done.wait (%p1119_p7), [#allocation6], 16  }
 0x26c   : > { %955 = vsyncadd (%p1119_p7), [#allocation6], 4294967280 }
 0x26d   : > { %957 = dma.done.wait (%p1119_p7), [#allocation8], 128  }
 0x26e   : > { %959 = vsyncadd (%p1119_p7), [#allocation8], 4294967168 }
 0x26f PF: > { %s18_s20 = sadd.s32 1, %s970_s20   ;;  %s1161_s18 = smov %s966_s19 }
 0x270   : > { %p15_p9 = scmp.ge.s32.totalorder %s18_s20, 4   ;;  %s1162_s19 = smov %s1164_s22 }
 0x272   :  { %17 = sbr.rel (!%p15_p9) target bundleno = 3 (0x3), region = 85 }
 0x277   :  { %697 = vsyncpa [#allocation6], 1 }
 0x278   :  { %699 = vsyncpa [#allocation6 + $0x1], 1 }
 0x279   :  { %700 = vsyncpa [#allocation8], 1 }

</bundles_post_ra>
